<compile_context>
chip_gen: v7x
topology: tpu7x:2x2x1
jax: 0.10.0
libtpu: 0.0.40
codegen_flags: <defaults>
</compile_context>

<pallas_src>
import jax
import jax.numpy as jnp
from jax import lax
from jax.experimental import pallas as pl
from jax.experimental.pallas import tpu as pltpu


def _round_up(v, m):
    return (v + m - 1) // m * m


def _vmem_budget_bytes():
    """~75% of physical VMEM: ~48 MiB on v7x, ~96 MiB on v5e/v6e."""
    try:
        cap = pltpu.get_tpu_info().vmem_capacity_bytes
    except Exception:
        cap = 64 * 1024 * 1024  # conservative (v7x-sized) fallback
    return int(cap * 0.75)


def _linear_kernel_f32_out(x_ref, w_ref, b_ref, o_ref):
    """f32 output tile doubles as the accumulator: no scratch, no final copy."""
    k = pl.program_id(2)

    @pl.when(k == 0)
    def _init():
        o_ref[...] = jnp.zeros_like(o_ref)

    # x tile [tm, tk] contracted with weight tile [tk, tn] (weight pre-packed
    # as [K, O], so this is a clean NN matmul on the MXU, f32 accumulation).
    o_ref[...] += lax.dot_general(
        x_ref[...], w_ref[...],
        dimension_numbers=(((1,), (0,)), ((), ())),
        preferred_element_type=jnp.float32)

    @pl.when(k == pl.num_programs(2) - 1)
    def _finalize():
        o_ref[...] += b_ref[...]


def _linear_kernel_scratch(x_ref, w_ref, b_ref, o_ref, acc_ref):
    """Low-precision output: accumulate in f32 VMEM scratch, cast once."""
    k = pl.program_id(2)

    @pl.when(k == 0)
    def _init():
        acc_ref[...] = jnp.zeros_like(acc_ref)

    acc_ref[...] += lax.dot_general(
        x_ref[...], w_ref[...],
        dimension_numbers=(((1,), (0,)), ((), ())),
        preferred_element_type=jnp.float32)

    @pl.when(k == pl.num_programs(2) - 1)
    def _finalize():
        o_ref[...] = (acc_ref[...] + b_ref[...]).astype(o_ref.dtype)


class LinearLayer:
    """Pallas equivalent of DialogRE LinearLayer (dropout(p=0.0) -> nn.Linear).

    Parameters are packed once at construction time (pad + transpose to [K, O]
    + cast to the MXU compute dtype); __call__ runs the tiled matmul kernel.
    """

    def __init__(self, weight, bias, *, dropout_rate=0.0,
                 compute_dtype=jnp.bfloat16,
                 max_tm=512, max_tn=512, max_tk=1024):
        # TODO(synk): training-mode stochastic dropout (p > 0) not implemented;
        # with p == 0.0 (the module's default) dropout is the identity.
        del dropout_rate

        self.out_dim, self.in_dim = weight.shape
        self.compute_dtype = jnp.dtype(compute_dtype)
        self.budget = _vmem_budget_bytes()

        O, K = self.out_dim, self.in_dim
        cbytes = self.compute_dtype.itemsize

        tn = min(max_tn, _round_up(O, 128))
        tk = min(max_tk, _round_up(K, 128))
        tm_cap = max_tm

        def needed(tm, tn_, tk_):
            # Worst-case double/triple-buffered working set (f32 out + scratch).
            return (2 * tm * tk_ * cbytes           # x tiles
                    + 3 * tk_ * tn_ * cbytes        # weight tiles (<= 3 bufs)
                    + 2 * tn_ * 4                   # bias tiles (f32)
                    + 2 * tm * tn_ * 4              # out tiles
                    + tm * tn_ * 4)                 # scratch accumulator

        # Shrink (rarely needed with large per-chip budgets) until it fits.
        while needed(tm_cap, tn, tk) > self.budget and tk > 128:
            tk = max(128, _round_up(tk // 2, 128))
        while needed(tm_cap, tn, tk) > self.budget and tn > 128:
            tn = max(128, _round_up(tn // 2, 128))
        while needed(tm_cap, tn, tk) > self.budget and tm_cap > 128:
            tm_cap //= 2

        self.tn, self.tk, self.max_tm = tn, tk, tm_cap
        self.Kp = _round_up(K, tk)
        self.Op = _round_up(O, tn)

        # One-time weight packing: pad -> transpose to [Kp, Op] -> cast.
        w = weight
        if (self.Op, self.Kp) != (O, K):
            w = jnp.pad(w, ((0, self.Op - O), (0, self.Kp - K)))
        self.w_packed = jnp.asarray(w.T, self.compute_dtype)        # [Kp, Op]

        b = bias.astype(jnp.float32).reshape(1, O)
        if self.Op != O:
            b = jnp.pad(b, ((0, 0), (0, self.Op - O)))
        self.b_packed = b                                           # [1, Op] f32

    def __call__(self, x):
        assert x.shape[-1] == self.in_dim
        lead_shape = x.shape[:-1]
        x2d = x.reshape(-1, self.in_dim)
        M, K = x2d.shape
        out_dtype = x.dtype
        cdt = self.compute_dtype
        cbytes = cdt.itemsize
        obytes = jnp.dtype(out_dtype).itemsize

        # Sublane packing: bf16 packs 2 rows/sublane -> tm multiple of 16
        # (8 for f32, 32 for 8-bit dtypes).
        sub = 8 * max(1, 4 // cbytes)
        tm = min(self.max_tm, _round_up(M, sub))
        tn, tk = self.tn, self.tk
        Mp = _round_up(M, tm)
        Kp, Op = self.Kp, self.Op

        grid_m, grid_k = Mp // tm, Kp // tk
        # v7x megacore: for decode-like single-M-block calls, split tn so the
        # two "parallel" grid axes expose >= 2 blocks for the 2 TensorCores.
        if grid_m == 1 and Op // tn == 1 and tn >= 256 and (tn // 2) % 128 == 0:
            tn = tn // 2
        grid_n = Op // tn

        # x is per-call data: cast to the compute dtype and pad only if needed.
        x2d = x2d.astype(cdt)
        if (Mp, Kp) != (M, K):
            x2d = jnp.pad(x2d, ((0, Mp - M), (0, Kp - K)))

        # Deep-buffer the weight stream for bandwidth-bound (small-M, long-K)
        # shapes to hide the DMA bubble at (i, j) chain boundaries.
        w_spec_kwargs = {}
        w_bufs = 2
        if grid_m == 1 and grid_k >= 3:
            w_spec_kwargs["pipeline_mode"] = pl.Buffered(3)
            w_bufs = 3
        w_spec = pl.BlockSpec((tk, tn), lambda i, j, k: (k, j), **w_spec_kwargs)

        out_is_f32 = out_dtype == jnp.float32
        kernel = _linear_kernel_f32_out if out_is_f32 else _linear_kernel_scratch
        scratch = [] if out_is_f32 else [pltpu.VMEM((tm, tn), jnp.float32)]

        needed = (2 * tm * tk * cbytes
                  + w_bufs * tk * tn * cbytes
                  + 2 * tn * 4
                  + 2 * tm * tn * obytes
                  + (0 if out_is_f32 else tm * tn * 4))
        vmem_limit = min(self.budget, max(int(needed * 1.5), 32 * 1024 * 1024))

        cost = pl.CostEstimate(
            flops=2 * Mp * Kp * Op,
            bytes_accessed=(Mp * Kp * cbytes * grid_n      # x re-streamed per N block
                            + Kp * Op * cbytes * grid_m    # w re-streamed per M block
                            + Op * 4 * grid_m              # bias
                            + Mp * Op * obytes),           # output write
            transcendentals=0)

        out = pl.pallas_call(
            kernel,
            out_shape=jax.ShapeDtypeStruct((Mp, Op), out_dtype),
            grid_spec=pltpu.PrefetchScalarGridSpec(
                num_scalar_prefetch=0,
                grid=(grid_m, grid_n, grid_k),
                in_specs=[
                    pl.BlockSpec((tm, tk), lambda i, j, k: (i, k)),   # x
                    w_spec,                                           # weight [Kp, Op]
                    pl.BlockSpec((1, tn), lambda i, j, k: (0, j)),    # bias (f32)
                ],
                out_specs=pl.BlockSpec((tm, tn), lambda i, j, k: (i, j)),
                scratch_shapes=scratch,
            ),
            compiler_params=pltpu.CompilerParams(
                dimension_semantics=("parallel", "parallel", "arbitrary"),
                vmem_limit_bytes=vmem_limit),
            cost_estimate=cost,
        )(x2d, self.w_packed, self.b_packed)

        out = out[:M, :self.out_dim]
        return out.reshape(*lead_shape, self.out_dim)


if __name__ == "__main__":
    key = jax.random.PRNGKey(0)
    k_x, k_w, k_b = jax.random.split(key, 3)

    batch, seq, input_dim, output_dim = 2, 8, 32, 16

    x = jax.random.normal(k_x, (batch, seq, input_dim), dtype=jnp.float32)

    # Deterministic params mimicking nn.Linear's uniform(-1/sqrt(K), 1/sqrt(K)).
    bound = 1.0 / (input_dim ** 0.5)
    weight = jax.random.uniform(
        k_w, (output_dim, input_dim), minval=-bound, maxval=bound,
        dtype=jnp.float32)
    bias = jax.random.uniform(
        k_b, (output_dim,), minval=-bound, maxval=bound, dtype=jnp.float32)

    layer = LinearLayer(weight, bias)          # bf16 MXU operands, f32 accum
    out = jax.block_until_ready(layer(x))

    assert out.shape == (batch, seq, output_dim)

    # Matched-precision reference (bf16 operands, f32 accumulation).
    ref_bf16 = lax.dot_general(
        x.reshape(-1, input_dim).astype(jnp.bfloat16),
        weight.astype(jnp.bfloat16),
        dimension_numbers=(((1,), (1,)), ((), ())),
        preferred_element_type=jnp.float32) + bias
    ref_bf16 = ref_bf16.reshape(batch, seq, output_dim)
    assert jnp.allclose(out, ref_bf16, atol=2e-3, rtol=2e-3)

    # Sanity vs. the full-f32 PyTorch-style reference (bf16 rounding slack).
    ref_f32 = x @ weight.T + bias
    assert jnp.allclose(out, ref_f32, atol=5e-2, rtol=5e-2)

    print("KERNEL_OK")
</pallas_src>

<mosaic_0001>
module attributes {stable_mosaic.version = 11 : i64} {
  func.func @_linear_kernel_f32_out(%arg0: i32, %arg1: i32, %arg2: i32, %arg3: memref<16x128xbf16, #tpu.memory_space<vmem>>, %arg4: memref<128x128xbf16, #tpu.memory_space<vmem>>, %arg5: memref<1x128xf32, #tpu.memory_space<vmem>>, %arg6: memref<16x128xf32, #tpu.memory_space<vmem>>) attributes {dimension_semantics = [#tpu.dimension_semantics<parallel>, #tpu.dimension_semantics<parallel>, #tpu.dimension_semantics<arbitrary>], iteration_bounds = array<i64: 1, 1, 1>, scalar_prefetch = 0 : i64, scratch_operands = 0 : i64, tpu.core_type = #tpu.core_type<tc>, window_params = [{transform_indices = @transform_0, window_bounds = array<i64: 16, 128>}, {transform_indices = @transform_1, window_bounds = array<i64: 128, 128>}, {transform_indices = @transform_2, window_bounds = array<i64: 1, 128>}, {transform_indices = @transform_3, window_bounds = array<i64: 16, 128>}]} {
    %c0_i32 = arith.constant 0 : i32
    %0 = arith.cmpi eq, %arg2, %c0_i32 : i32
    %1 = arith.extui %0 : i1 to i32
    %c0_i32_0 = arith.constant 0 : i32
    %2 = arith.cmpi ne, %1, %c0_i32_0 : i32
    scf.if %2 {
      %cst_10 = arith.constant 0.000000e+00 : f32
      %12 = vector.broadcast %cst_10 : f32 to vector<16x128xf32>
      %c0_11 = arith.constant 0 : index
      %c0_12 = arith.constant 0 : index
      %13 = vector.load %arg6[%c0_11, %c0_12] : memref<16x128xf32, #tpu.memory_space<vmem>>, vector<16x128xf32>
      tpu.vector_store %arg6[%c0_11, %c0_12], %12 {strides = array<i32>} : memref<16x128xf32, #tpu.memory_space<vmem>>, vector<16x128xf32>,
    } else {
    }
    %c0 = arith.constant 0 : index
    %c0_1 = arith.constant 0 : index
    %3 = vector.load %arg6[%c0, %c0_1] : memref<16x128xf32, #tpu.memory_space<vmem>>, vector<16x128xf32>
    %c0_2 = arith.constant 0 : index
    %c0_3 = arith.constant 0 : index
    %4 = vector.load %arg3[%c0_2, %c0_3] : memref<16x128xbf16, #tpu.memory_space<vmem>>, vector<16x128xbf16>
    %c0_4 = arith.constant 0 : index
    %c0_5 = arith.constant 0 : index
    %5 = vector.load %arg4[%c0_4, %c0_5] : memref<128x128xbf16, #tpu.memory_space<vmem>>, vector<128x128xbf16>
    %cst = arith.constant dense<0.000000e+00> : vector<16x128xf32>
    %6 = tpu.matmul %4, %5, %cst {dimension_numbers = #tpu.dot_dimension_numbers<[1], [0], [0], [1], [0, 0, 1, 1], [], []>} : vector<16x128xbf16>, vector<128x128xbf16>, vector<16x128xf32> -> vector<16x128xf32>
    %7 = arith.addf %3, %6 : vector<16x128xf32>
    %c0_6 = arith.constant 0 : index
    %c0_7 = arith.constant 0 : index
    %8 = vector.load %arg6[%c0_6, %c0_7] : memref<16x128xf32, #tpu.memory_space<vmem>>, vector<16x128xf32>
    tpu.vector_store %arg6[%c0_6, %c0_7], %7 {strides = array<i32>} : memref<16x128xf32, #tpu.memory_space<vmem>>, vector<16x128xf32>,
    %c0_i32_8 = arith.constant 0 : i32
    %9 = arith.cmpi eq, %arg2, %c0_i32_8 : i32
    %10 = arith.extui %9 : i1 to i32
    %c0_i32_9 = arith.constant 0 : i32
    %11 = arith.cmpi ne, %10, %c0_i32_9 : i32
    scf.if %11 {
      %c0_10 = arith.constant 0 : index
      %c0_11 = arith.constant 0 : index
      %12 = vector.load %arg6[%c0_10, %c0_11] : memref<16x128xf32, #tpu.memory_space<vmem>>, vector<16x128xf32>
      %c0_12 = arith.constant 0 : index
      %c0_13 = arith.constant 0 : index
      %13 = vector.load %arg5[%c0_12, %c0_13] : memref<1x128xf32, #tpu.memory_space<vmem>>, vector<1x128xf32>
      %14 = vector.broadcast %13 : vector<1x128xf32> to vector<16x128xf32>
      %15 = arith.addf %12, %14 : vector<16x128xf32>
      %c0_14 = arith.constant 0 : index
      %c0_15 = arith.constant 0 : index
      %16 = vector.load %arg6[%c0_14, %c0_15] : memref<16x128xf32, #tpu.memory_space<vmem>>, vector<16x128xf32>
      tpu.vector_store %arg6[%c0_14, %c0_15], %15 {strides = array<i32>} : memref<16x128xf32, #tpu.memory_space<vmem>>, vector<16x128xf32>,
    } else {
    }
    return
  }
  func.func @transform_0(%arg0: i32, %arg1: i32, %arg2: i32) -> (i32, i32) {
    %c0_i32 = arith.constant 0 : i32
    return %arg0, %arg2 : i32, i32
  }
  func.func @transform_1(%arg0: i32, %arg1: i32, %arg2: i32) -> (i32, i32) {
    %c0_i32 = arith.constant 0 : i32
    return %arg2, %arg1 : i32, i32
  }
  func.func @transform_2(%arg0: i32, %arg1: i32, %arg2: i32) -> (i32, i32) {
    %c0_i32 = arith.constant 0 : i32
    %c0_i32_0 = arith.constant 0 : i32
    return %c0_i32, %arg1 : i32, i32
  }
  func.func @transform_3(%arg0: i32, %arg1: i32, %arg2: i32) -> (i32, i32) {
    %c0_i32 = arith.constant 0 : i32
    return %arg0, %arg1 : i32, i32
  }
}

</mosaic_0001>

<bundles_post_ra>
// kernel: tpu_custom_call.1
= control target key start
LH: loop header
LB: loop body
LE: loop exit
PB: predicated region body
PF: predicated region fallthrough
CT: control target
= control target key end

     0   :  { %8 = vsyncpa [#allocation3], 0  ;;  %s400_s0 = inlined_call_operand.hbm [shape: bf16[16,128], index: 0, kind: input, shape index: {}]   ;;  %s401_s1 = inlined_call_operand.hbm [shape: bf16[128,128], index: 1, kind: input, shape index: {}]   ;;  %s402_s2 = inlined_call_operand.vmem [shape: f32[1,128], index: 2, kind: input, shape index: {}]   ;;  %s403_s3 = inlined_call_operand.hbm [shape: f32[16,128], index: 3, kind: output, shape index: {}]  }
   0x1   :  { %9 = vsyncpa [#allocation6], 0 }
   0x2   :  { %10 = vsyncpa [#allocation4], 0  ;;  %s332_s12 = smov [#allocation2]   ;;  %s260_s16 = scalar_lea.hbm %s400_s0, 128 }
   0x3   :  { %s16_s13 = sshll.u32 %s332_s12, 4  ;;  %p261_p0 = scmp.ne.s32.totalorder %s400_s0, %s260_s16  ;;  %s17_s13 = int_to_ptr.vmem [resolvable:$true] %s16_s13 }
   0x4   :  { %p264_p1 = scmp.lt.u32.totalorder %s260_s16, %s400_s0 }
   0x6   :  { %p266_p2 = pnand %p264_p1, %p261_p0 }
   0x8   :  { %269 = shalt.err (!%p266_p2)
}
   0x9   :  { %s270_s21 = scalar_lea.vmem %s17_s13, 128  ;;  %p275_p4 = scmp.lt.s32.totalorder %s17_s13, %s17_s13 }
   0xa   :  { %p271_p3 = scmp.ne.s32.totalorder %s17_s13, %s270_s21  ;;  %p276_p5 = scmp.lt.s32.totalorder %s270_s21, %s270_s21 }
   0xc   :  { %p277_p6 = por %p276_p5, %p275_p4 }
   0xe   :  { %p278_p7 = pnand %p277_p6, %p271_p3 }
  0x10   :  { %281 = shalt.err (!%p278_p7)
}
  0x11   :  { %s333_s22 = smov 64   ;;  %s334_s23 = smov 4  }
  0x12   :  { %22 = dma.hbm_to_vmem [thread:$0]  %s400_s0, 128, %s17_s13, [#allocation3], %s333_s22, %s333_s22, %s334_s23  }
  0x13   :  { %s335_s26 = smov [#allocation5]   ;;  %s282_s30 = scalar_lea.hbm %s401_s1, 1024 }
  0x14   :  { %s28_s27 = sshll.u32 %s335_s26, 4  ;;  %p283_p8 = scmp.ne.s32.totalorder %s401_s1, %s282_s30  ;;  %s29_s27 = int_to_ptr.vmem [resolvable:$true] %s28_s27 }
  0x15   :  { %p286_p9 = scmp.lt.u32.totalorder %s282_s30, %s401_s1 }
  0x17   :  { %p288_p10 = pnand %p286_p9, %p283_p8 }
  0x19   :  { %291 = shalt.err (!%p288_p10)
}
  0x1a   :  { %s292_s8 = scalar_lea.vmem %s29_s27, 1024  ;;  %p297_p12 = scmp.lt.s32.totalorder %s29_s27, %s29_s27 }
  0x1b   :  { %p293_p11 = scmp.ne.s32.totalorder %s29_s27, %s292_s8  ;;  %p298_p13 = scmp.lt.s32.totalorder %s292_s8, %s292_s8 }
  0x1d   :  { %p299_p0 = por %p298_p13, %p297_p12 }
  0x1f   :  { %p300_p1 = pnand %p299_p0, %p293_p11 }
  0x21   :  { %303 = shalt.err (!%p300_p1)
}
  0x22   :  { %34 = dma.hbm_to_vmem [thread:$0]  %s401_s1, 1024, %s29_s27, [#allocation6], %s333_s22, %s333_s22, %s334_s23  }
  0x23   :  { %326 = dma.done.wait [#allocation3], 128  }
  0x24   :  { %327 = vsyncadd [#allocation3], 4294967168 }
  0x25   :  { %328 = dma.done.wait [#allocation6], 1024  }
  0x26   :  { %329 = vsyncadd [#allocation6], 4294966272  ;;  %v336_v0 = vmov 0.0   ;;  %vm337_vm0 = vmmov 0   ;;  %v251_v1 = vld [vmem:[#allocation5] sm:$0xff]   ;;  %v252_v2 = vld [vmem:[#allocation5 + $0x8] sm:$0xff]  }
  0x27   :  { %222 = vmatprep.subr.bf16.mxu0 %v336_v0  ;;  %238 = vmatprep.mubr.msk.bf16.mxu0 %vm337_vm0, %v336_v0  ;;  %v253_v3 = vld [vmem:[#allocation5 + $0x10] sm:$0xff]   ;;  %v254_v4 = vld [vmem:[#allocation5 + $0x18] sm:$0xff]   ;;  %v255_v5 = vld [vmem:[#allocation5 + $0x20] sm:$0xff]   ;;  %s338_s11 = smov [#allocation7]  }
  0x28   :  { %223 = vmatpush3.bf16.msra.mxu0 %v251_v1  ;;  %v256_v6 = vld [vmem:[#allocation5 + $0x28] sm:$0xff]   ;;  %v257_v7 = vld [vmem:[#allocation5 + $0x30] sm:$0xff]   ;;  %v258_v8 = vld [vmem:[#allocation5 + $0x38] sm:$0xff]   ;;  %s190_s12 = sshll.u32 %s338_s11, 4  ;;  %s191_s12 = int_to_ptr.vmem [resolvable:$true] %s190_s12 }
  0x29   :  { %224 = vmatprep.subr.bf16.mxu0 %v336_v0  ;;  %v259_v9 = vld [vmem:[#allocation2] sm:$0xff]   ;;  %s304_s13 = scalar_lea.vmem %s191_s12, 256  ;;  %p309_p3 = scmp.lt.s32.totalorder %s191_s12, %s191_s12 }
  0x2a   :  { %v212_v11 = vld [vmem:[%s402_s2] ss:$0 sm:$0xff]  ;;  %p305_p2 = scmp.ne.s32.totalorder %s191_s12, %s304_s13  ;;  %p310_p4 = scmp.lt.s32.totalorder %s304_s13, %s304_s13 }
  0x2c   :  { %225 = vmatpush3.bf16.msra.mxu0 %v252_v2  ;;  %p311_p5 = por %p310_p4, %p309_p3 }
  0x2d   :  { %226 = vmatprep.subr.bf16.mxu0 %v336_v0 }
  0x2e   :  { %p312_p6 = pnand %p311_p5, %p305_p2 }
  0x30   :  { %227 = vmatpush3.bf16.msra.mxu0 %v253_v3 }
  0x31   :  { %228 = vmatprep.subr.bf16.mxu0 %v336_v0 }
  0x34   :  { %229 = vmatpush3.bf16.msra.mxu0 %v254_v4 }
  0x35   :  { %230 = vmatprep.subr.bf16.mxu0 %v336_v0 }
  0x38   :  { %231 = vmatpush3.bf16.msra.mxu0 %v255_v5 }
  0x39   :  { %232 = vmatprep.subr.bf16.mxu0 %v336_v0 }
  0x3c   :  { %233 = vmatpush3.bf16.msra.mxu0 %v256_v6 }
  0x3d   :  { %234 = vmatprep.subr.bf16.mxu0 %v336_v0 }
  0x40   :  { %235 = vmatpush3.bf16.msra.mxu0 %v257_v7 }
  0x41   :  { %236 = vmatprep.subr.bf16.mxu0 %v336_v0 }
  0x44   :  { %237 = vmatpush3.bf16.msra.mxu0 %v258_v8 }
  0x47   :  { %239 = vmatmul.mubr.bf16.vlgmr.msra.gmra.mrb[0].mxu0 %v259_v9 }
 0x11a   :  { %v158_v10 = vpop.f32.mrb[0].mxu0 }
 0x11b   :  { %v240_v12 = vpop.f32.mrb[1].mxu0  ;;  %v181_v15 = vadd.f32 %v212_v11, %v158_v10 }
 0x11c   :  { %v161_v13 = vpop.f32.mrb[2].mxu0 }
 0x11d   :  { %v241_v14 = vpop.f32.mrb[3].mxu0  ;;  %v182_v16 = vadd.f32 %v212_v11, %v161_v13  ;;  %183 = vst [vmem:[#allocation7] sm:$0xff] %v181_v15 }
 0x11f   :  { %184 = vst [vmem:[#allocation7 + $0x8] sm:$0xff] %v182_v16 }
 0x120   :  { %315 = shalt.err (!%p312_p6)
}
 0x121   :  { %s316_s2 = scalar_lea.hbm %s403_s3, 256 }
 0x122   :  { %p317_p7 = scmp.ne.s32.totalorder %s403_s3, %s316_s2  ;;  %p320_p8 = scmp.lt.u32.totalorder %s316_s2, %s403_s3 }
 0x124   :  { %p322_p9 = pnand %p320_p8, %p317_p7 }
 0x126   :  { %325 = shalt.err (!%p322_p9)
}
 0x127   :  { %s339_s20 = smov 128   ;;  %s340_s21 = smov 8  }
 0x128   :  { %196 = dma.vmem_to_hbm [thread:$0]  %s191_s12, 256, %s403_s3, [#allocation4], %s339_s20, %s339_s20, %s340_s21  }
 0x129   :  { %330 = dma.done.wait [#allocation4], 256  }
 0x12a   :  { %331 = vsyncadd [#allocation4], 4294967040 }
 0x12b   :  { %200 = vsyncpa [#allocation3], 1 }
 0x12c   :  { %201 = vsyncpa [#allocation6], 1 }
 0x12d   :  { %202 = vsyncpa [#allocation4], 1 }

</bundles_post_ra>
